<compile_context>
chip_gen: v7x
topology: tpu7x:2x2x1
jax: 0.10.0
libtpu: 0.0.40
codegen_flags: <defaults>
</compile_context>

<pallas_src>
import functools
import math

import jax
import jax.numpy as jnp
from jax.experimental import pallas as pl
from jax.experimental.pallas import tpu as pltpu

_VMEM_LIMIT = 64 * 1024 * 1024  # <= physical VMEM on v5e/v6e/v7x


def _pick_block(dim, target, align):
    """Largest multiple of `align` <= target that divides `dim` exactly;
    falls back to the full dim (single block) so no boundary padding occurs."""
    if dim <= target:
        return dim
    t = (target // align) * align
    while t >= align:
        if dim % t == 0:
            return t
        t -= align
    return dim


# ----------------------------- kernels -------------------------------------

def _qkv_proj_kernel(xq_ref, xk_ref, xv_ref,
                     wq_ref, wk_ref, wv_ref,
                     bq_ref, bk_ref, bv_ref,
                     q_ref, k_ref, v_ref):
    """Fused Q/K/V projection for one (batch, seq-tile, head) grid step.

    x*_ref: [1, ts, D]   w*_ref: [1, D, dk]   b*_ref: [1, 1, dk]
    outputs q/k/v_ref: [1, 1, ts, dk]  (per-head layout, no transposes needed)
    """
    def proj(x_ref, w_ref, b_ref, o_ref):
        acc = jnp.dot(x_ref[0], w_ref[0], preferred_element_type=jnp.float32)
        o_ref[0, 0] = (acc + b_ref[0]).astype(o_ref.dtype)

    proj(xq_ref, wq_ref, bq_ref, q_ref)
    proj(xk_ref, wk_ref, bk_ref, k_ref)
    proj(xv_ref, wv_ref, bv_ref, v_ref)


def _attention_kernel(q_ref, k_ref, v_ref, o_ref, w_ref, *, scale):
    """Scaled dot-product attention for one (batch, head, q-block) grid step.

    q_ref: [1,1,tq,dk]  k_ref/v_ref: [1,1,S,dk]
    o_ref: [1,1,tq,dk]  w_ref: [1,1,tq,S]
    """
    q = q_ref[0, 0] * scale                     # scale Q (tq*dk), not scores (tq*S)
    k = k_ref[0, 0]
    v = v_ref[0, 0]

    # QK^T without materializing a transposed K operand.
    scores = jax.lax.dot_general(
        q, k, dimension_numbers=(((1,), (1,)), ((), ())),
        preferred_element_type=jnp.float32)     # [tq, S], f32

    m = jnp.max(scores, axis=-1, keepdims=True)
    e = jnp.exp(scores - m)
    denom = jnp.sum(e, axis=-1, keepdims=True)  # [tq, 1]
    inv = pl.reciprocal(denom, approx=True)     # EUP slot
    inv = inv * (2.0 - denom * inv)             # one Newton step on [tq,1]: ~f32 exact
    attn = e * inv

    w_ref[0, 0] = attn.astype(w_ref.dtype)
    o_ref[0, 0] = jnp.dot(attn.astype(v.dtype), v,
                          preferred_element_type=jnp.float32).astype(o_ref.dtype)


def _out_proj_kernel(a_ref, w_ref, b_ref, o_ref, acc_ref):
    """w_o projection; the head axis is the grid's reduction axis.

    a_ref: [1,1,ts,dk]  w_ref: [1,dk,D]  b_ref: [1,D]
    o_ref: [1,ts,D]     acc_ref: [ts,D] f32 scratch
    """
    h = pl.program_id(2)

    @pl.when(h == 0)
    def _():
        acc_ref[...] = jnp.zeros_like(acc_ref)

    acc_ref[...] += jnp.dot(a_ref[0, 0], w_ref[0],
                            preferred_element_type=jnp.float32)

    @pl.when(h == pl.num_programs(2) - 1)
    def _():
        o_ref[0] = (acc_ref[...] + b_ref[...]).astype(o_ref.dtype)


# ----------------------------- wrappers -------------------------------------

def pallas_qkv_projection(query, key, value, wq, wk, wv, bq, bk, bv, *,
                          seq_block=256):
    """Fused Q/K/V projection.  Inputs [B,S,D]; per-head weights [H,D,dk],
    biases [H,1,dk].  Returns Q, K, V in [B, H, S, dk] layout."""
    B, S, D = query.shape
    H, _, dk = wq.shape
    ts = _pick_block(S, seq_block, 8)
    grid = (B, S // ts, H)   # head axis innermost -> activation tile DMA'd once

    x_spec = pl.BlockSpec((1, ts, D), lambda b, sb, h: (b, sb, 0))
    w_spec = pl.BlockSpec((1, D, dk), lambda b, sb, h: (h, 0, 0))
    b_spec = pl.BlockSpec((1, 1, dk), lambda b, sb, h: (h, 0, 0))
    o_spec = pl.BlockSpec((1, 1, ts, dk), lambda b, sb, h: (b, h, sb, 0))
    out_sd = jax.ShapeDtypeStruct((B, H, S, dk), query.dtype)

    return pl.pallas_call(
        _qkv_proj_kernel,
        out_shape=(out_sd, out_sd, out_sd),
        grid=grid,
        in_specs=[x_spec, x_spec, x_spec,
                  w_spec, w_spec, w_spec,
                  b_spec, b_spec, b_spec],
        out_specs=(o_spec, o_spec, o_spec),
        compiler_params=pltpu.CompilerParams(
            dimension_semantics=("parallel", "parallel", "parallel"),
            vmem_limit_bytes=_VMEM_LIMIT),
    )(query, key, value, wq, wk, wv, bq, bk, bv)


def pallas_attention(Q, K, V, *, q_block=256):
    """Scaled dot-product attention per (batch, head), q-block tiled.

    Q, K, V: [B, H, S, dk] -> (out [B,H,S,dk], weights [B,H,S,S] f32)."""
    B, H, S, dk = Q.shape
    tq = _pick_block(S, q_block, 8)
    grid = (B, H, S // tq)
    scale = 1.0 / math.sqrt(dk)
    kernel = functools.partial(_attention_kernel, scale=scale)

    return pl.pallas_call(
        kernel,
        out_shape=(jax.ShapeDtypeStruct((B, H, S, dk), Q.dtype),
                   jax.ShapeDtypeStruct((B, H, S, S), jnp.float32)),
        grid=grid,
        in_specs=[
            pl.BlockSpec((1, 1, tq, dk), lambda b, h, qb: (b, h, qb, 0)),
            pl.BlockSpec((1, 1, S, dk), lambda b, h, qb: (b, h, 0, 0)),
            pl.BlockSpec((1, 1, S, dk), lambda b, h, qb: (b, h, 0, 0)),
        ],
        out_specs=(
            pl.BlockSpec((1, 1, tq, dk), lambda b, h, qb: (b, h, qb, 0)),
            pl.BlockSpec((1, 1, tq, S), lambda b, h, qb: (b, h, qb, 0)),
        ),
        compiler_params=pltpu.CompilerParams(
            dimension_semantics=("parallel", "parallel", "parallel"),
            vmem_limit_bytes=_VMEM_LIMIT),
    )(Q, K, V)


def pallas_output_projection(attn_out, wo, bo, *, seq_block=256):
    """out = concat_heads(attn_out) @ Wo + bo, consuming [B,H,S,dk] directly.

    attn_out: [B,H,S,dk], wo: [H,dk,D], bo: [1,D] -> [B,S,D]."""
    B, H, S, dk = attn_out.shape
    D = wo.shape[-1]
    ts = _pick_block(S, seq_block, 8)
    grid = (B, S // ts, H)   # head axis is the reduction ("arbitrary") axis

    return pl.pallas_call(
        _out_proj_kernel,
        out_shape=jax.ShapeDtypeStruct((B, S, D), attn_out.dtype),
        grid=grid,
        in_specs=[
            pl.BlockSpec((1, 1, ts, dk), lambda b, sb, h: (b, h, sb, 0)),
            pl.BlockSpec((1, dk, D), lambda b, sb, h: (h, 0, 0)),
            pl.BlockSpec((1, D), lambda b, sb, h: (0, 0)),
        ],
        out_specs=pl.BlockSpec((1, ts, D), lambda b, sb, h: (b, sb, 0)),
        scratch_shapes=[pltpu.VMEM((ts, D), jnp.float32)],
        compiler_params=pltpu.CompilerParams(
            dimension_semantics=("parallel", "parallel", "arbitrary"),
            vmem_limit_bytes=_VMEM_LIMIT),
    )(attn_out, wo, bo)


def cached_mha_forward(kparams, query, key, value):
    """Equivalent to CachedMultiHeadAttention.forward(query, key, value)
    with mask=None, use_cache=False, eval-mode dropout."""
    Q, K, V = pallas_qkv_projection(
        query, key, value,
        kparams["wq"], kparams["wk"], kparams["wv"],
        kparams["bq"], kparams["bk"], kparams["bv"])
    attn_out, attn_weights = pallas_attention(Q, K, V)
    out = pallas_output_projection(attn_out, kparams["wo"], kparams["bo"])
    return out, attn_weights


# ----------------------------- parameters -----------------------------------

def init_dense_params(key, d_model):
    """nn.Linear-style params; weights stored [d_in, d_out] (= PyTorch W.T)."""
    ks = jax.random.split(key, 8)
    bound = 1.0 / math.sqrt(d_model)

    def w(k):
        return jax.random.uniform(k, (d_model, d_model), jnp.float32, -bound, bound)

    def b(k):
        return jax.random.uniform(k, (d_model,), jnp.float32, -bound, bound)

    return {"wq": w(ks[0]), "bq": b(ks[1]),
            "wk": w(ks[2]), "bk": b(ks[3]),
            "wv": w(ks[4]), "bv": b(ks[5]),
            "wo": w(ks[6]), "bo": b(ks[7])}


def prepare_kernel_params(dense, d_model, num_heads):
    """One-time param re-layout (host side, free at run time):
    q/k/v weights -> [H, D, dk], biases -> [H, 1, dk]; wo -> [H, dk, D]."""
    dk = d_model // num_heads

    def per_head_in(w):   # [D, D] -> [H, D, dk]
        return jnp.transpose(w.reshape(d_model, num_heads, dk), (1, 0, 2))

    return {
        "wq": per_head_in(dense["wq"]), "bq": dense["bq"].reshape(num_heads, 1, dk),
        "wk": per_head_in(dense["wk"]), "bk": dense["bk"].reshape(num_heads, 1, dk),
        "wv": per_head_in(dense["wv"]), "bv": dense["bv"].reshape(num_heads, 1, dk),
        "wo": dense["wo"].reshape(num_heads, dk, d_model),
        "bo": dense["bo"].reshape(1, d_model),
    }


# ----------------------------- main ------------------------------------------

if __name__ == "__main__":
    B, S, D, H = 2, 8, 32, 4
    root = jax.random.PRNGKey(0)
    k_param, k_q, k_k, k_v = jax.random.split(root, 4)

    dense = init_dense_params(k_param, D)
    kparams = prepare_kernel_params(dense, D, H)

    query = jax.random.normal(k_q, (B, S, D), jnp.float32)
    key_ = jax.random.normal(k_k, (B, S, D), jnp.float32)
    value = jax.random.normal(k_v, (B, S, D), jnp.float32)

    out, attn_w = cached_mha_forward(kparams, query, key_, value)
    out = jax.block_until_ready(out)
    attn_w = jax.block_until_ready(attn_w)

    # Pure-JAX reference (mirrors the PyTorch module).
    def ref_forward(p, q, k, v):
        dk = D // H

        def proj(x, w, b):
            return (x.reshape(B * S, D) @ w + b).reshape(B, S, H, dk).transpose(0, 2, 1, 3)

        Q = proj(q, p["wq"], p["bq"])
        K = proj(k, p["wk"], p["bk"])
        V = proj(v, p["wv"], p["bv"])
        scores = jnp.einsum("bhqd,bhkd->bhqk", Q, K) / math.sqrt(dk)
        w_ = jax.nn.softmax(scores, axis=-1)
        o = jnp.einsum("bhqk,bhkd->bhqd", w_, V)
        o = o.transpose(0, 2, 1, 3).reshape(B * S, D)
        return (o @ p["wo"] + p["bo"]).reshape(B, S, D), w_

    ref_out, ref_w = ref_forward(dense, query, key_, value)
    assert out.shape == (B, S, D) and attn_w.shape == (B, H, S, S)
    assert jnp.allclose(out, ref_out, atol=1e-4, rtol=1e-4)
    assert jnp.allclose(attn_w, ref_w, atol=1e-4, rtol=1e-4)

    print("KERNEL_OK")
</pallas_src>

<mosaic_0001>
module attributes {stable_mosaic.version = 11 : i64} {
  func.func @_qkv_proj_kernel(%arg0: i32, %arg1: i32, %arg2: i32, %arg3: memref<1x8x32xf32, #tpu.memory_space<vmem>>, %arg4: memref<1x8x32xf32, #tpu.memory_space<vmem>>, %arg5: memref<1x8x32xf32, #tpu.memory_space<vmem>>, %arg6: memref<1x32x8xf32, #tpu.memory_space<vmem>>, %arg7: memref<1x32x8xf32, #tpu.memory_space<vmem>>, %arg8: memref<1x32x8xf32, #tpu.memory_space<vmem>>, %arg9: memref<1x1x8xf32, #tpu.memory_space<vmem>>, %arg10: memref<1x1x8xf32, #tpu.memory_space<vmem>>, %arg11: memref<1x1x8xf32, #tpu.memory_space<vmem>>, %arg12: memref<1x1x8x8xf32, #tpu.memory_space<vmem>>, %arg13: memref<1x1x8x8xf32, #tpu.memory_space<vmem>>, %arg14: memref<1x1x8x8xf32, #tpu.memory_space<vmem>>) attributes {dimension_semantics = [#tpu.dimension_semantics<parallel>, #tpu.dimension_semantics<parallel>, #tpu.dimension_semantics<parallel>], iteration_bounds = array<i64: 2, 1, 4>, scalar_prefetch = 0 : i64, scratch_operands = 0 : i64, tpu.core_type = #tpu.core_type<tc>, window_params = [{transform_indices = @transform_0, window_bounds = array<i64: 1, 8, 32>}, {transform_indices = @transform_1, window_bounds = array<i64: 1, 8, 32>}, {transform_indices = @transform_2, window_bounds = array<i64: 1, 8, 32>}, {transform_indices = @transform_3, window_bounds = array<i64: 1, 32, 8>}, {transform_indices = @transform_4, window_bounds = array<i64: 1, 32, 8>}, {transform_indices = @transform_5, window_bounds = array<i64: 1, 32, 8>}, {transform_indices = @transform_6, window_bounds = array<i64: 1, 1, 8>}, {transform_indices = @transform_7, window_bounds = array<i64: 1, 1, 8>}, {transform_indices = @transform_8, window_bounds = array<i64: 1, 1, 8>}, {transform_indices = @transform_9, window_bounds = array<i64: 1, 1, 8, 8>}, {transform_indices = @transform_10, window_bounds = array<i64: 1, 1, 8, 8>}, {transform_indices = @transform_11, window_bounds = array<i64: 1, 1, 8, 8>}]} {
    %c0 = arith.constant 0 : index
    %c0_0 = arith.constant 0 : index
    %c0_1 = arith.constant 0 : index
    %0 = vector.load %arg3[%c0, %c0_0, %c0_1] : memref<1x8x32xf32, #tpu.memory_space<vmem>>, vector<1x8x32xf32>
    %1 = vector.shape_cast %0 : vector<1x8x32xf32> to vector<8x32xf32>
    %c0_2 = arith.constant 0 : index
    %c0_3 = arith.constant 0 : index
    %c0_4 = arith.constant 0 : index
    %2 = vector.load %arg6[%c0_2, %c0_3, %c0_4] : memref<1x32x8xf32, #tpu.memory_space<vmem>>, vector<1x32x8xf32>
    %3 = vector.shape_cast %2 : vector<1x32x8xf32> to vector<32x8xf32>
    %cst = arith.constant dense<0.000000e+00> : vector<8x8xf32>
    %4 = tpu.matmul %1, %3, %cst {dimension_numbers = #tpu.dot_dimension_numbers<[1], [0], [0], [1], [0, 0, 1, 1], [], []>} : vector<8x32xf32>, vector<32x8xf32>, vector<8x8xf32> -> vector<8x8xf32>
    %c0_5 = arith.constant 0 : index
    %c0_6 = arith.constant 0 : index
    %c0_7 = arith.constant 0 : index
    %5 = vector.load %arg9[%c0_5, %c0_6, %c0_7] : memref<1x1x8xf32, #tpu.memory_space<vmem>>, vector<1x1x8xf32>
    %6 = vector.shape_cast %5 : vector<1x1x8xf32> to vector<1x8xf32>
    %7 = vector.broadcast %6 : vector<1x8xf32> to vector<8x8xf32>
    %8 = arith.addf %4, %7 : vector<8x8xf32>
    %c0_8 = arith.constant 0 : index
    %c0_9 = arith.constant 0 : index
    %c0_10 = arith.constant 0 : index
    %c0_11 = arith.constant 0 : index
    %9 = vector.load %arg12[%c0_8, %c0_9, %c0_10, %c0_11] : memref<1x1x8x8xf32, #tpu.memory_space<vmem>>, vector<1x1x8x8xf32>
    %10 = vector.shape_cast %9 : vector<1x1x8x8xf32> to vector<8x8xf32>
    %11 = vector.shape_cast %8 : vector<8x8xf32> to vector<1x1x8x8xf32>
    tpu.vector_store %arg12[%c0_8, %c0_9, %c0_10, %c0_11], %11 {strides = array<i32>} : memref<1x1x8x8xf32, #tpu.memory_space<vmem>>, vector<1x1x8x8xf32>,
    %c0_12 = arith.constant 0 : index
    %c0_13 = arith.constant 0 : index
    %c0_14 = arith.constant 0 : index
    %12 = vector.load %arg4[%c0_12, %c0_13, %c0_14] : memref<1x8x32xf32, #tpu.memory_space<vmem>>, vector<1x8x32xf32>
    %13 = vector.shape_cast %12 : vector<1x8x32xf32> to vector<8x32xf32>
    %c0_15 = arith.constant 0 : index
    %c0_16 = arith.constant 0 : index
    %c0_17 = arith.constant 0 : index
    %14 = vector.load %arg7[%c0_15, %c0_16, %c0_17] : memref<1x32x8xf32, #tpu.memory_space<vmem>>, vector<1x32x8xf32>
    %15 = vector.shape_cast %14 : vector<1x32x8xf32> to vector<32x8xf32>
    %cst_18 = arith.constant dense<0.000000e+00> : vector<8x8xf32>
    %16 = tpu.matmul %13, %15, %cst_18 {dimension_numbers = #tpu.dot_dimension_numbers<[1], [0], [0], [1], [0, 0, 1, 1], [], []>} : vector<8x32xf32>, vector<32x8xf32>, vector<8x8xf32> -> vector<8x8xf32>
    %c0_19 = arith.constant 0 : index
    %c0_20 = arith.constant 0 : index
    %c0_21 = arith.constant 0 : index
    %17 = vector.load %arg10[%c0_19, %c0_20, %c0_21] : memref<1x1x8xf32, #tpu.memory_space<vmem>>, vector<1x1x8xf32>
    %18 = vector.shape_cast %17 : vector<1x1x8xf32> to vector<1x8xf32>
    %19 = vector.broadcast %18 : vector<1x8xf32> to vector<8x8xf32>
    %20 = arith.addf %16, %19 : vector<8x8xf32>
    %c0_22 = arith.constant 0 : index
    %c0_23 = arith.constant 0 : index
    %c0_24 = arith.constant 0 : index
    %c0_25 = arith.constant 0 : index
    %21 = vector.load %arg13[%c0_22, %c0_23, %c0_24, %c0_25] : memref<1x1x8x8xf32, #tpu.memory_space<vmem>>, vector<1x1x8x8xf32>
    %22 = vector.shape_cast %21 : vector<1x1x8x8xf32> to vector<8x8xf32>
    %23 = vector.shape_cast %20 : vector<8x8xf32> to vector<1x1x8x8xf32>
    tpu.vector_store %arg13[%c0_22, %c0_23, %c0_24, %c0_25], %23 {strides = array<i32>} : memref<1x1x8x8xf32, #tpu.memory_space<vmem>>, vector<1x1x8x8xf32>,
    %c0_26 = arith.constant 0 : index
    %c0_27 = arith.constant 0 : index
    %c0_28 = arith.constant 0 : index
    %24 = vector.load %arg5[%c0_26, %c0_27, %c0_28] : memref<1x8x32xf32, #tpu.memory_space<vmem>>, vector<1x8x32xf32>
    %25 = vector.shape_cast %24 : vector<1x8x32xf32> to vector<8x32xf32>
    %c0_29 = arith.constant 0 : index
    %c0_30 = arith.constant 0 : index
    %c0_31 = arith.constant 0 : index
    %26 = vector.load %arg8[%c0_29, %c0_30, %c0_31] : memref<1x32x8xf32, #tpu.memory_space<vmem>>, vector<1x32x8xf32>
    %27 = vector.shape_cast %26 : vector<1x32x8xf32> to vector<32x8xf32>
    %cst_32 = arith.constant dense<0.000000e+00> : vector<8x8xf32>
    %28 = tpu.matmul %25, %27, %cst_32 {dimension_numbers = #tpu.dot_dimension_numbers<[1], [0], [0], [1], [0, 0, 1, 1], [], []>} : vector<8x32xf32>, vector<32x8xf32>, vector<8x8xf32> -> vector<8x8xf32>
    %c0_33 = arith.constant 0 : index
    %c0_34 = arith.constant 0 : index
    %c0_35 = arith.constant 0 : index
    %29 = vector.load %arg11[%c0_33, %c0_34, %c0_35] : memref<1x1x8xf32, #tpu.memory_space<vmem>>, vector<1x1x8xf32>
    %30 = vector.shape_cast %29 : vector<1x1x8xf32> to vector<1x8xf32>
    %31 = vector.broadcast %30 : vector<1x8xf32> to vector<8x8xf32>
    %32 = arith.addf %28, %31 : vector<8x8xf32>
    %c0_36 = arith.constant 0 : index
    %c0_37 = arith.constant 0 : index
    %c0_38 = arith.constant 0 : index
    %c0_39 = arith.constant 0 : index
    %33 = vector.load %arg14[%c0_36, %c0_37, %c0_38, %c0_39] : memref<1x1x8x8xf32, #tpu.memory_space<vmem>>, vector<1x1x8x8xf32>
    %34 = vector.shape_cast %33 : vector<1x1x8x8xf32> to vector<8x8xf32>
    %35 = vector.shape_cast %32 : vector<8x8xf32> to vector<1x1x8x8xf32>
    tpu.vector_store %arg14[%c0_36, %c0_37, %c0_38, %c0_39], %35 {strides = array<i32>} : memref<1x1x8x8xf32, #tpu.memory_space<vmem>>, vector<1x1x8x8xf32>,
    return
  }
  func.func @transform_0(%arg0: i32, %arg1: i32, %arg2: i32) -> (i32, i32, i32) {
    %c0_i32 = arith.constant 0 : i32
    %c0_i32_0 = arith.constant 0 : i32
    return %arg0, %arg1, %c0_i32 : i32, i32, i32
  }
  func.func @transform_1(%arg0: i32, %arg1: i32, %arg2: i32) -> (i32, i32, i32) {
    %c0_i32 = arith.constant 0 : i32
    %c0_i32_0 = arith.constant 0 : i32
    return %arg0, %arg1, %c0_i32 : i32, i32, i32
  }
  func.func @transform_2(%arg0: i32, %arg1: i32, %arg2: i32) -> (i32, i32, i32) {
    %c0_i32 = arith.constant 0 : i32
    %c0_i32_0 = arith.constant 0 : i32
    return %arg0, %arg1, %c0_i32 : i32, i32, i32
  }
  func.func @transform_3(%arg0: i32, %arg1: i32, %arg2: i32) -> (i32, i32, i32) {
    %c0_i32 = arith.constant 0 : i32
    %c0_i32_0 = arith.constant 0 : i32
    %c0_i32_1 = arith.constant 0 : i32
    return %arg2, %c0_i32, %c0_i32_0 : i32, i32, i32
  }
  func.func @transform_4(%arg0: i32, %arg1: i32, %arg2: i32) -> (i32, i32, i32) {
    %c0_i32 = arith.constant 0 : i32
    %c0_i32_0 = arith.constant 0 : i32
    %c0_i32_1 = arith.constant 0 : i32
    return %arg2, %c0_i32, %c0_i32_0 : i32, i32, i32
  }
  func.func @transform_5(%arg0: i32, %arg1: i32, %arg2: i32) -> (i32, i32, i32) {
    %c0_i32 = arith.constant 0 : i32
    %c0_i32_0 = arith.constant 0 : i32
    %c0_i32_1 = arith.constant 0 : i32
    return %arg2, %c0_i32, %c0_i32_0 : i32, i32, i32
  }
  func.func @transform_6(%arg0: i32, %arg1: i32, %arg2: i32) -> (i32, i32, i32) {
    %c0_i32 = arith.constant 0 : i32
    %c0_i32_0 = arith.constant 0 : i32
    %c0_i32_1 = arith.constant 0 : i32
    return %arg2, %c0_i32, %c0_i32_0 : i32, i32, i32
  }
  func.func @transform_7(%arg0: i32, %arg1: i32, %arg2: i32) -> (i32, i32, i32) {
    %c0_i32 = arith.constant 0 : i32
    %c0_i32_0 = arith.constant 0 : i32
    %c0_i32_1 = arith.constant 0 : i32
    return %arg2, %c0_i32, %c0_i32_0 : i32, i32, i32
  }
  func.func @transform_8(%arg0: i32, %arg1: i32, %arg2: i32) -> (i32, i32, i32) {
    %c0_i32 = arith.constant 0 : i32
    %c0_i32_0 = arith.constant 0 : i32
    %c0_i32_1 = arith.constant 0 : i32
    return %arg2, %c0_i32, %c0_i32_0 : i32, i32, i32
  }
  func.func @transform_9(%arg0: i32, %arg1: i32, %arg2: i32) -> (i32, i32, i32, i32) {
    %c0_i32 = arith.constant 0 : i32
    %c0_i32_0 = arith.constant 0 : i32
    return %arg0, %arg2, %arg1, %c0_i32 : i32, i32, i32, i32
  }
  func.func @transform_10(%arg0: i32, %arg1: i32, %arg2: i32) -> (i32, i32, i32, i32) {
    %c0_i32 = arith.constant 0 : i32
    %c0_i32_0 = arith.constant 0 : i32
    return %arg0, %arg2, %arg1, %c0_i32 : i32, i32, i32, i32
  }
  func.func @transform_11(%arg0: i32, %arg1: i32, %arg2: i32) -> (i32, i32, i32, i32) {
    %c0_i32 = arith.constant 0 : i32
    %c0_i32_0 = arith.constant 0 : i32
    return %arg0, %arg2, %arg1, %c0_i32 : i32, i32, i32, i32
  }
}

</mosaic_0001>

<bundles_post_ra>
// kernel: tpu_custom_call.1
= control target key start
LH: loop header
LB: loop body
LE: loop exit
PB: predicated region body
PF: predicated region fallthrough
CT: control target
= control target key end

     0   :  { %s2937_s0 = inlined_call_operand.hbm [shape: f32[2,8,32], index: 0, kind: input, shape index: {}]   ;;  %s2938_s1 = inlined_call_operand.hbm [shape: f32[2,8,32], index: 1, kind: input, shape index: {}]   ;;  %s2939_s2 = inlined_call_operand.hbm [shape: f32[2,8,32], index: 2, kind: input, shape index: {}]   ;;  %s2940_s3 = inlined_call_operand.hbm [shape: f32[4,32,8], index: 3, kind: input, shape index: {}]   ;;  %s2941_s4 = inlined_call_operand.hbm [shape: f32[4,32,8], index: 4, kind: input, shape index: {}]   ;;  %s2942_s5 = inlined_call_operand.hbm [shape: f32[4,32,8], index: 5, kind: input, shape index: {}]   ;;  %s2943_s6 = inlined_call_operand.hbm [shape: f32[4,1,8], index: 6, kind: input, shape index: {}]   ;;  %s2944_s7 = inlined_call_operand.hbm [shape: f32[4,1,8], index: 7, kind: input, shape index: {}]   ;;  %s2945_s8 = inlined_call_operand.hbm [shape: f32[4,1,8], index: 8, kind: input, shape index: {}]   ;;  %s2946_s9 = inlined_call_operand.hbm [shape: f32[2,4,8,8], index: 9, kind: output, shape index: {0}]   ;;  %s2947_s10 = inlined_call_operand.hbm [shape: f32[2,4,8,8], index: 10, kind: output, shape index: {1}]   ;;  %s2948_s11 = inlined_call_operand.hbm [shape: f32[2,4,8,8], index: 11, kind: output, shape index: {2}]  }
   0x1   :  { %2988 = sst [smem:[#allocation49_spill]] %s2938_s1 }
   0x2   :  { %2989 = sst [smem:[#allocation50_spill]] %s2940_s3 }
   0x3   :  { %2990 = sst [smem:[#allocation51_spill]] %s2942_s5 }
   0x4   :  { %2991 = sst [smem:[#allocation52_spill]] %s2945_s8 }
   0x5   :  { %2992 = sst [smem:[#allocation53_spill]] %s2946_s9 }
   0x6   :  { %2993 = sst [smem:[#allocation54_spill]] %s2947_s10 }
   0x7   :  { %2994 = sst [smem:[#allocation55_spill]] %s2948_s11 }
   0x8   :  { %17 = vsyncpa [#allocation3], 0 }
   0x9   :  { %19 = vsyncpa [#allocation3 + $0x1], 0 }
   0xa   :  { %20 = vsyncpa [#allocation6], 0 }
   0xb   :  { %22 = vsyncpa [#allocation6 + $0x1], 0 }
   0xc   :  { %23 = vsyncpa [#allocation9], 0 }
   0xd   :  { %25 = vsyncpa [#allocation9 + $0x1], 0 }
   0xe   :  { %26 = vsyncpa [#allocation12], 0 }
   0xf   :  { %28 = vsyncpa [#allocation12 + $0x1], 0 }
  0x10   :  { %29 = vsyncpa [#allocation15], 0 }
  0x11   :  { %31 = vsyncpa [#allocation15 + $0x1], 0 }
  0x12   :  { %32 = vsyncpa [#allocation4], 0 }
  0x13   :  { %34 = vsyncpa [#allocation4 + $0x1], 0 }
  0x14   :  { %35 = vsyncpa [#allocation19], 0 }
  0x15   :  { %37 = vsyncpa [#allocation19 + $0x1], 0  ;;  %s2253_s17 = smov 0   ;;  %s2255_s18 = smov 0  }
  0x16   :  { %s2257_s19 = smov 0   ;;  %s2259_s20 = smov 0  }
  0x17   :  { %s2261_s21 = smov 0   ;;  %s2263_s22 = smov 0  }
  0x18   :  { %s2265_s23 = smov 0   ;;  %s2267_s24 = smov 0  }
  0x19   :  { %s2269_s25 = smov 0   ;;  %s2271_s26 = smov 0  }
  0x1a   :  { %s2273_s27 = smov 0   ;;  %s2275_s28 = smov 0  }
  0x1b   :  { %s2277_s29 = smov 0   ;;  %s2279_s30 = smov 0  }
  0x1c LB: > { %2995 = sst [smem:[#allocation28_spill]] %s2122_s17  ;;  %s2322_s12 = sadd.s32 4294967295, %s2174_s30   ;;  %s2174_s30 = sphi %s2279_s30, %s43_s30   ;;  %s2170_s29 = sphi %s2277_s29, %s3092_s29   ;;  %s2166_s28 = sphi %s2275_s28, %s3091_s28   ;;  %s2162_s27 = sphi %s2273_s27, %s3084_s27   ;;  %s2158_s26 = sphi %s2271_s26, %s3090_s26   ;;  %s2154_s25 = sphi %s2269_s25, %s3089_s25   ;;  %s2150_s24 = sphi %s2267_s24, %s3088_s24   ;;  %s2146_s23 = sphi %s2265_s23, %s3082_s23   ;;  %s2142_s22 = sphi %s2263_s22, %s3081_s22   ;;  %s2138_s21 = sphi %s2261_s21, %s3080_s21   ;;  %s2134_s20 = sphi %s2259_s20, %s3079_s20   ;;  %s2130_s19 = sphi %s2257_s19, %s3078_s19   ;;  %s2126_s18 = sphi %s2255_s18, %s3077_s18   ;;  %s2122_s17 = sphi %s2253_s17, %s3076_s17  }
  0x1d   : > { %2996 = sst [smem:[#allocation29_spill]] %s2126_s18  ;;  %s55_s14 = sadd.s32 1, %s2166_s28 }
  0x1e   : > { %2997 = sst [smem:[#allocation30_spill]] %s2130_s19  ;;  %s62_s15 = sadd.s32 1, %s2170_s29 }
  0x1f   : > { %2998 = sst [smem:[#allocation31_spill]] %s2138_s21  ;;  %p56_p0 = scmp.ge.s32.totalorder %s55_s14, 4 }
  0x20   : > { %2999 = sst [smem:[#allocation32_spill]] %s2142_s22  ;;  %s71_s16 = sadd.s32 1, %s2154_s25 }
  0x21   : > { %3000 = sst [smem:[#allocation33_spill]] %s2150_s24  ;;  %p78_p1 = scmp.ne.s32.totalorder %s2154_s25, %s2150_s24 }
  0x22   : > { %3001 = sst [smem:[#allocation34_spill]] %s2158_s26  ;;  %p79_p2 = scmp.eq.s32.totalorder %s2174_s30, 0 }
  0x23   : > { %3002 = sst [smem:[#allocation35_spill]] %s2162_s27  ;;  %s3094_s14 = smov (%p56_p0, %s55_s14), 0 }
  0x24   : > { %3003 = sst [smem:[#allocation36_spill]] %s2170_s29  ;;  %s3096_s15 = smov (!%p56_p0, %s62_s15), %s2170_s29 }
  0x25   : > { %3004 = sst [smem:[#allocation37_spill]] %s2174_s30  ;;  %p2336_p3 = por %p79_p2, %p78_p1 }
  0x26   : > { %3005 = sst [smem:[#allocation38_spill]] %s2322_s12  ;;  %p84_p4 = scmp.ne.s32.totalorder %s2150_s24, %s2146_s23 }
  0x27   : > { %3006 = sst [smem:[#allocation39_spill]] %s3094_s14  ;;  %p64_p5 = scmp.ge.s32.totalorder %s3096_s15, 2 }
  0x28   : > { %p85_p6 = scmp.eq.s32.totalorder %s2322_s12, 0  ;;  %s150_s11 = ssub.s32 %s2166_s28, %s3094_s14 }
  0x29   : > { %s153_s10 = sadd.s32 1, %s2142_s22  ;;  %s3098_s15 = smov (%p64_p5, %s3096_s15), 0 }
  0x2a   : > { %3008 = sst [smem:[#allocation40_spill]] %s3098_s15  ;;  %p2349_p7 = por %p85_p6, %p84_p4 }
  0x2b   : > { %p151_p8 = scmp.eq.s32.totalorder %s150_s11, 0  ;;  %s66_s23 = ssub.s32 %s2170_s29, %s3098_s15 }
  0x2c   : > { %s3009_s9 = scalar_select %p2349_p7, 1, 0 }
  0x2d   : > { %p160_p9 = scmp.ne.s32.totalorder %s2142_s22, %s2138_s21  ;;  %p69_p10 = scmp.eq.s32.totalorder %s66_s23, 0 }
  0x2e   : > { %3010 = sst [smem:[#allocation41_spill]] %s3009_s9  ;;  %p166_p11 = scmp.ne.s32.totalorder %s2138_s21, %s2134_s20 }
  0x2f   : > { %s2360_s14 = scalar_select %p151_p8, %s2142_s22, %s153_s10  }
  0x30   : > { %s2363_s26 = scalar_select %p69_p10, %s2154_s25, %s71_s16  }
  0x31   : > { %3011 = sst [smem:[#allocation42_spill]] %s2360_s14  ;;  %p2367_p12 = por %p160_p9, %p79_p2 }
  0x32   : > { %3012 = sst [smem:[#allocation43_spill]] %s2363_s26  ;;  %p2373_p13 = por %p166_p11, %p85_p6 }
  0x33   : > { %s308_s20 = sor.u32 %s150_s11, %s66_s23  ;;  %s313_s21 = sadd.s32 1, %s2130_s19 }
  0x34   : > { %s3014_s15 = scalar_select %p2373_p13, 1, 0 }
  0x35   : > { %p311_p0 = scmp.eq.s32.totalorder %s308_s20, 0  ;;  %p323_p1 = scmp.ne.s32.totalorder %s2130_s19, %s2126_s18 }
  0x36   : > { %3015 = sst [smem:[#allocation44_spill]] %s3014_s15  ;;  %p324_p4 = scmp.eq.s32.totalorder %s2322_s12, 7 }
  0x37   : > { %p329_p5 = scmp.ne.s32.totalorder %s2126_s18, %s2122_s17  ;;  %s3019_s26 = sadd.s32 4294967294, %s2174_s30  }
  0x38   : > { %s2384_s10 = scalar_select %p311_p0, %s2130_s19, %s313_s21  }
  0x39   : > { %p2386_p2 = por %p324_p4, %p323_p1  ;;  %p330_p6 = scmp.eq.s32.totalorder %s3019_s26, 7 }
  0x3a   : > { %3016 = sst [smem:[#allocation45_spill]] %s2384_s10  ;;  %p1563_p8 = scmp.lt.s32.totalorder %s2174_s30, 8 }
  0x3b   : > { %s3017_s16 = scalar_select %p2386_p2, 1, 0 }
  0x3c   : > { %p2393_p9 = por %p330_p6, %p329_p5  ;;  %s2957_s11 = sand.u32 1, %s2154_s25  }
  0x3d   : > { %3018 = sst [smem:[#allocation46_spill]] %s3017_s16  ;;  %s2400_s23 = sshll.u32 %s2957_s11, 3 }
  0x3e   : > { %s3020_s14 = scalar_select %p2393_p9, 1, 0 }
  0x3f   : > { %s2403_s20 = sshll.u32 %s2170_s29, 7  ;;  %p2407_p10 = pnand %p1563_p8, %p2336_p3 }
  0x40   : > { %3021 = sst [smem:[#allocation47_spill]] %s3020_s14  ;;  %s2412_s26 = sand.u32 1, %s2174_s30  }
  0x41   : > { %s3022_s21 = scalar_select %p2407_p10, 1, 0 }
  0x42   : > { %s3023_s1 = sld [smem:[#allocation49_spill]]  ;;  %s433_s11 = scalar_lea.vmem [#allocation5], %s2400_s23 }
  0x43   : > { %s441_s13 = sshll.u32 %s433_s11, 4  ;;  %p2423_p3 = pnand %p1563_p8, %p2367_p12  ;;  %s2427_s13 = int_to_ptr.vmem [resolvable:$true] %s441_s13 }
  0x44   : > { %p2435_p1 = pneg %p2407_p10 }
  0x45   : > { %s3024_s29 = scalar_select %p2423_p3, 1, 0 }
  0x46   : > { %s3025_s19 = scalar_select %p2435_p1, 1, 0 }
  0x48   : > { %s2418_s14 = scalar_lea.hbm %s3023_s1, %s2403_s20  ;;  %s1687_s11 = scalar_lea.hbm %s3023_s1, 256 }
  0x49   : > { %s1682_s16 = scalar_lea.hbm %s2418_s14, 128  ;;  %p1688_p12 = scmp.lt.u32.totalorder %s2418_s14, %s3023_s1 }
  0x4a   : > { %p1683_p0 = scmp.ne.s32.totalorder %s2418_s14, %s1682_s16  ;;  %p1689_p6 = scmp.lt.u32.totalorder %s1687_s11, %s1682_s16 }
  0x4b   : > { %p1691_p11 = scmp.lt.u32.totalorder %s1682_s16, %s2418_s14 }
  0x4c   : > { %p1685_p4 = pnand %p2435_p1, %p1683_p0  ;;  %p1690_p8 = por %p1689_p6, %p1688_p12 }
  0x4e   : > { %p1686_p5 = pneg %p1685_p4  ;;  %p1692_p9 = por %p1691_p11, %p1690_p8 }
  0x50   : > { %p1693_p2 = pnand %p1692_p9, %p1686_p5 }
  0x52   : > { %1696 = shalt.err (!%p1693_p2)
}
  0x53   : > { %s1697_s17 = scalar_lea.vmem %s2427_s13, 128  ;;  %s2176_s27 = smov [#allocation5]  }
  0x54   : > { %p1698_p0 = scmp.ne.s32.totalorder %s2427_s13, %s1697_s17  ;;  %s1702_s10 = sshll.u32 %s2176_s27, 4  ;;  %s1703_s10 = int_to_ptr.vmem [resolvable:$false] %s1702_s10 }
  0x55   : > { %s1704_s18 = scalar_lea.vmem %s1703_s10, 256  ;;  %p1705_p7 = scmp.lt.s32.totalorder %s2427_s13, %s1703_s10 }
  0x56   : > { %p1700_p4 = pnand %p1698_p0, %p2435_p1  ;;  %p1706_p3 = scmp.lt.s32.totalorder %s1704_s18, %s1697_s17 }
  0x58   : > { %p1701_p13 = pneg %p1700_p4  ;;  %p1707_p12 = por %p1706_p3, %p1705_p7 }
  0x5a   : > { %p1708_p6 = pnand %p1707_p12, %p1701_p13 }
  0x5c   : > { %1711 = shalt.err (!%p1708_p6)
}
  0x5d   : > { %s3026_s15 = scalar_lea.sflag [#allocation6], %s2412_s26  ;;  %p579_p2 = scmp.lt.s32.totalorder %s2174_s30, 9 }
  0x5e   : > { %1531 = dma.hbm_to_vmem [thread:$0]  (!%p2407_p10), %s2418_s14, 128, %s2427_s13, %s3026_s15  }
  0x5f   : > { %s2462_s16 = sand.u32 1, %s2142_s22   ;;  %p3027_p9 = scmp.ge.s32.totalorder %s2174_s30, 1 }
  0x60   : > { %s2471_s11 = sshll.u32 %s2462_s16, 5  ;;  %s2474_s27 = sshll.u32 %s2166_s28, 9 }
  0x61   : > { %p2466_p7 = pnand %p3027_p9, %p579_p2  ;;  %s3030_s3 = sld [smem:[#allocation50_spill]] }
  0x62   : > { %s471_s14 = scalar_lea.vmem [#allocation8], %s2471_s11  ;;  %p3031_p3 = scmp.ne.s32.totalorder %s3024_s29, 0 }
  0x63   : > { %s3028_s17 = scalar_select %p2466_p7, 1, 0 }
  0x64   : > { %s478_s13 = sshll.u32 %s471_s14, 4  ;;  %p2490_p11 = pneg %p3031_p3  ;;  %s2483_s13 = int_to_ptr.vmem [resolvable:$true] %s478_s13 }
  0x65   : > { %3029 = sst [smem:[#allocation48_spill]] %s3028_s17 }
  0x66   : > { %s3032_s30 = scalar_select %p2490_p11, 1, 0 }
  0x67   : > { %s2480_s1 = scalar_lea.hbm %s3030_s3, %s2474_s27  ;;  %s1717_s12 = scalar_lea.hbm %s3030_s3, 2048 }
  0x68   : > { %s1712_s22 = scalar_lea.hbm %s2480_s1, 512  ;;  %p1718_p0 = scmp.lt.u32.totalorder %s2480_s1, %s3030_s3 }
  0x69   : > { %p1713_p13 = scmp.ne.s32.totalorder %s2480_s1, %s1712_s22  ;;  %p1719_p4 = scmp.lt.u32.totalorder %s1717_s12, %s1712_s22 }
  0x6a   : > { %p1721_p6 = scmp.lt.u32.totalorder %s1712_s22, %s2480_s1 }
  0x6b   : > { %p1715_p5 = pnand %p2490_p11, %p1713_p13  ;;  %p1720_p12 = por %p1719_p4, %p1718_p0 }
  0x6d   : > { %p1716_p8 = pneg %p1715_p5  ;;  %p1722_p2 = por %p1721_p6, %p1720_p12 }
  0x6f   : > { %p1723_p9 = pnand %p1722_p2, %p1716_p8 }
  0x71   : > { %1726 = shalt.err (!%p1723_p9)
}
  0x72   : > { %s1727_s15 = scalar_lea.vmem %s2483_s13, 512  ;;  %s2177_s10 = smov [#allocation8]  }
  0x73   : > { %p1728_p13 = scmp.ne.s32.totalorder %s2483_s13, %s1727_s15  ;;  %s1732_s18 = sshll.u32 %s2177_s10, 4  ;;  %s1733_s18 = int_to_ptr.vmem [resolvable:$false] %s1732_s18 }
  0x74   : > { %s1734_s9 = scalar_lea.vmem %s1733_s18, 1024  ;;  %p1735_p10 = scmp.lt.s32.totalorder %s2483_s13, %s1733_s18 }
  0x75   : > { %p1730_p5 = pnand %p1728_p13, %p2490_p11  ;;  %p1736_p1 = scmp.lt.s32.totalorder %s1734_s9, %s1727_s15 }
  0x77   : > { %p1731_p7 = pneg %p1730_p5  ;;  %p1737_p0 = por %p1736_p1, %p1735_p10 }
  0x79   : > { %p1738_p4 = pnand %p1737_p0, %p1731_p7 }
  0x7b   : > { %1741 = shalt.err (!%p1738_p4)
}
  0x7c   : > { %s2983_s22 = smov 128   ;;  %s2179_s12 = smov 8  }
  0x7d   : > { %s3033_s14 = scalar_lea.sflag [#allocation9], %s2412_s26  ;;  %s3034_s5 = sld [smem:[#allocation51_spill]] }
  0x7e   : > { %1537 = dma.hbm_to_vmem [thread:$0]  (!%p3031_p3), %s2480_s1, 512, %s2483_s13, %s3033_s14, %s2983_s22, %s2983_s22, %s2179_s12  }
  0x7f   : > { %s513_s9 = scalar_lea.vmem [#allocation11], %s2471_s11  ;;  %s2526_s24 = sshll.u32 %s2166_s28, 4 }
  0x80   : > { %s520_s3 = sshll.u32 %s513_s9, 4  ;;  %s2982_s17 = scalar_lea.sflag [#allocation12], %s2412_s26  ;;  %s2528_s3 = int_to_ptr.vmem [resolvable:$true] %s520_s3 }
  0x83   : > { %s2522_s18 = scalar_lea.hbm %s3034_s5, %s2474_s27  ;;  %s1747_s14 = scalar_lea.hbm %s3034_s5, 2048 }
  0x84   : > { %s1742_s8 = scalar_lea.hbm %s2522_s18, 512  ;;  %p1748_p8 = scmp.lt.u32.totalorder %s2522_s18, %s3034_s5 }
  0x85   : > { %p1743_p10 = scmp.ne.s32.totalorder %s2522_s18, %s1742_s8  ;;  %p1749_p12 = scmp.lt.u32.totalorder %s1747_s14, %s1742_s8 }
  0x86   : > { %p1751_p2 = scmp.lt.u32.totalorder %s1742_s8, %s2522_s18 }
  0x87   : > { %p1745_p1 = pnand %p1743_p10, %p2490_p11  ;;  %p1750_p6 = por %p1749_p12, %p1748_p8 }
  0x89   : > { %p1746_p7 = pneg %p1745_p1  ;;  %p1752_p9 = por %p1751_p2, %p1750_p6 }
  0x8b   : > { %p1753_p13 = pnand %p1752_p9, %p1746_p7 }
  0x8d   : > { %1756 = shalt.err (!%p1753_p13)
}
  0x8e   : > { %s1757_s9 = scalar_lea.vmem %s2528_s3, 512  ;;  %s2180_s1 = smov [#allocation11]  }
  0x8f   : > { %p1758_p5 = scmp.ne.s32.totalorder %s2528_s3, %s1757_s9  ;;  %s1762_s13 = sshll.u32 %s2180_s1, 4  ;;  %s1763_s13 = int_to_ptr.vmem [resolvable:$false] %s1762_s13 }
  0x90   : > { %s1764_s15 = scalar_lea.vmem %s1763_s13, 1024  ;;  %p1765_p10 = scmp.lt.s32.totalorder %s2528_s3, %s1763_s13 }
  0x91   : > { %p1760_p0 = pnand %p1758_p5, %p2490_p11  ;;  %p1766_p1 = scmp.lt.s32.totalorder %s1764_s15, %s1757_s9 }
  0x93   : > { %p1761_p4 = pneg %p1760_p0  ;;  %p1767_p8 = por %p1766_p1, %p1765_p10 }
  0x95   : > { %p1768_p12 = pnand %p1767_p8, %p1761_p4 }
  0x97   : > { %1771 = shalt.err (!%p1768_p12)
}
  0x98   : > { %1543 = dma.hbm_to_vmem [thread:$0]  (!%p3031_p3), %s2522_s18, 512, %s2528_s3, %s2982_s17, %s2983_s22, %s2983_s22, %s2179_s12  }
  0x99   : > { %s2561_s10 = scalar_lea.hbm %s2944_s7, %s2526_s24  ;;  %s550_s9 = scalar_lea.vmem [#allocation14], %s2462_s16 }
  0x9a   : > { %s557_s1 = sshll.u32 %s550_s9, 4  ;;  %s2985_s13 = scalar_lea.sflag [#allocation15], %s2412_s26  ;;  %s558_s1 = int_to_ptr.vmem [resolvable:$true] %s557_s1 }
  0x9b   : > { %s1772_s15 = scalar_lea.hbm %s2561_s10, 16  ;;  %s1777_s18 = scalar_lea.hbm %s2944_s7, 64 }
  0x9c   : > { %p1773_p7 = scmp.ne.s32.totalorder %s2561_s10, %s1772_s15  ;;  %p1778_p9 = scmp.lt.u32.totalorder %s2561_s10, %s2944_s7 }
  0x9d   : > { %p1779_p13 = scmp.lt.u32.totalorder %s1777_s18, %s1772_s15  ;;  %p1781_p0 = scmp.lt.u32.totalorder %s1772_s15, %s2561_s10 }
  0x9e   : > { %p1775_p6 = pnand %p1773_p7, %p2490_p11 }
  0x9f   : > { %p1780_p5 = por %p1779_p13, %p1778_p9 }
  0xa0   : > { %p1776_p2 = pneg %p1775_p6 }
  0xa1   : > { %p1782_p4 = por %p1781_p0, %p1780_p5 }
  0xa3   : > { %p1783_p10 = pnand %p1782_p4, %p1776_p2 }
  0xa5   : > { %1786 = shalt.err (!%p1783_p10)
}
  0xa6   : > { %s1787_s9 = scalar_lea.vmem %s558_s1, 16  ;;  %s2181_s17 = smov [#allocation14]  }
  0xa7   : > { %p1788_p1 = scmp.ne.s32.totalorder %s558_s1, %s1787_s9  ;;  %s1792_s22 = sshll.u32 %s2181_s17, 4  ;;  %s1793_s22 = int_to_ptr.vmem [resolvable:$false] %s1792_s22 }
  0xa8   : > { %s1794_s5 = scalar_lea.vmem %s1793_s22, 32  ;;  %p1795_p7 = scmp.lt.s32.totalorder %s558_s1, %s1793_s22 }
  0xa9   : > { %p1790_p8 = pnand %p1788_p1, %p2490_p11  ;;  %p1796_p6 = scmp.lt.s32.totalorder %s1794_s5, %s1787_s9 }
  0xab   : > { %p1791_p12 = pneg %p1790_p8  ;;  %p1797_p3 = por %p1796_p6, %p1795_p7 }
  0xad   : > { %p1798_p9 = pnand %p1797_p3, %p1791_p12 }
  0xaf   : > { %1801 = shalt.err (!%p1798_p9)
}
  0xb0   : > { %p3035_p13 = scmp.ne.s32.totalorder %s3024_s29, 0  ;;  %s2588_s17 = scalar_lea.hbm %s2937_s0, %s2403_s20 }
  0xb1   : > { %s414_s22 = scalar_lea.vmem [#allocation2], %s2400_s23  ;;  %s3036_s8 = sand.u32 1, %s2154_s25  }
  0xb2   : > { %1549 = dma.hbm_to_vmem [thread:$0]  (!%p3035_p13), %s2561_s10, 16, %s558_s1, %s2985_s13  }
  0xb3   : > { %s422_s18 = sshll.u32 %s414_s22, 4  ;;  %s411_s14 = scalar_lea.sflag [#allocation3], %s3036_s8  ;;  %s423_s18 = int_to_ptr.vmem [resolvable:$true] %s422_s18 }
  0xb4   : > { %s1802_s9 = scalar_lea.hbm %s2588_s17, 128  ;;  %p3037_p2 = scmp.ne.s32.totalorder %s3025_s19, 0 }
  0xb5   : > { %p1803_p3 = scmp.ne.s32.totalorder %s2588_s17, %s1802_s9  ;;  %s1807_s5 = scalar_lea.hbm %s2937_s0, 256 }
  0xb6   : > { %p1808_p4 = scmp.lt.u32.totalorder %s2588_s17, %s2937_s0  ;;  %p1809_p10 = scmp.lt.u32.totalorder %s1807_s5, %s1802_s9 }
  0xb7   : > { %p1805_p5 = pnand %p1803_p3, %p3037_p2  ;;  %p1811_p8 = scmp.lt.u32.totalorder %s1802_s9, %s2588_s17 }
  0xb8   : > { %p1810_p1 = por %p1809_p10, %p1808_p4 }
  0xb9   : > { %p1806_p0 = pneg %p1805_p5 }
  0xba   : > { %p1812_p12 = por %p1811_p8, %p1810_p1 }
  0xbc   : > { %p1813_p7 = pnand %p1812_p12, %p1806_p0 }
  0xbe   : > { %1816 = shalt.err (!%p1813_p7)
}
  0xbf   : > { %s1817_s22 = scalar_lea.vmem %s423_s18, 128  ;;  %s2182_s8 = smov [#allocation2]  }
  0xc0   : > { %p1818_p6 = scmp.ne.s32.totalorder %s423_s18, %s1817_s22  ;;  %s1822_s13 = sshll.u32 %s2182_s8, 4  ;;  %s1823_s13 = int_to_ptr.vmem [resolvable:$false] %s1822_s13 }
  0xc1   : > { %s1824_s10 = scalar_lea.vmem %s1823_s13, 256  ;;  %p1825_p5 = scmp.lt.s32.totalorder %s423_s18, %s1823_s13 }
  0xc2   : > { %p1820_p9 = pnand %p1818_p6, %p3037_p2  ;;  %p1826_p13 = scmp.lt.s32.totalorder %s1824_s10, %s1817_s22 }
  0xc4   : > { %p1821_p3 = pneg %p1820_p9  ;;  %p1827_p11 = por %p1826_p13, %p1825_p5 }
  0xc6   : > { %p1828_p4 = pnand %p1827_p11, %p1821_p3 }
  0xc8   : > { %1831 = shalt.err (!%p1828_p4)
}
  0xc9   : > { %p3038_p10 = scmp.ne.s32.totalorder %s3022_s21, 0  ;;  %s2614_s5 = scalar_lea.hbm %s2939_s2, %s2403_s20 }
  0xca   : > { %s452_s13 = scalar_lea.vmem [#allocation7], %s2400_s23  ;;  %s1832_s3 = scalar_lea.hbm %s2614_s5, 128 }
  0xcb   : > { %1528 = dma.hbm_to_vmem [thread:$0]  (!%p3038_p10), %s2588_s17, 128, %s423_s18, %s411_s14  }
  0xcc   : > { %s460_s15 = sshll.u32 %s452_s13, 4  ;;  %p1833_p11 = scmp.ne.s32.totalorder %s2614_s5, %s1832_s3  ;;  %s461_s15 = int_to_ptr.vmem [resolvable:$true] %s460_s15 }
  0xcd   : > { %s1837_s17 = scalar_lea.hbm %s2939_s2, 256  ;;  %p1838_p1 = scmp.lt.u32.totalorder %s2614_s5, %s2939_s2 }
  0xce   : > { %p1835_p13 = pnand %p1833_p11, %p3037_p2  ;;  %p1839_p8 = scmp.lt.u32.totalorder %s1837_s17, %s1832_s3 }
  0xcf   : > { %p1841_p7 = scmp.lt.u32.totalorder %s1832_s3, %s2614_s5 }
  0xd0   : > { %p1836_p0 = pneg %p1835_p13  ;;  %p1840_p12 = por %p1839_p8, %p1838_p1 }
  0xd2   : > { %p1842_p6 = por %p1841_p7, %p1840_p12 }
  0xd4   : > { %p1843_p9 = pnand %p1842_p6, %p1836_p0 }
  0xd6   : > { %1846 = shalt.err (!%p1843_p9)
}
  0xd7   : > { %s1847_s23 = scalar_lea.vmem %s461_s15, 128  ;;  %s2183_s20 = smov [#allocation7]  }
  0xd8   : > { %p1848_p3 = scmp.ne.s32.totalorder %s461_s15, %s1847_s23  ;;  %s1852_s10 = sshll.u32 %s2183_s20, 4  ;;  %s1853_s10 = int_to_ptr.vmem [resolvable:$false] %s1852_s10 }
  0xd9   : > { %s1854_s9 = scalar_lea.vmem %s1853_s10, 256  ;;  %p1855_p11 = scmp.lt.s32.totalorder %s461_s15, %s1853_s10 }
  0xda   : > { %p1850_p5 = pnand %p1848_p3, %p3037_p2  ;;  %p1856_p13 = scmp.lt.s32.totalorder %s1854_s9, %s1847_s23 }
  0xdc   : > { %p1851_p4 = pneg %p1850_p5  ;;  %p1857_p10 = por %p1856_p13, %p1855_p11 }
  0xde   : > { %p1858_p1 = pnand %p1857_p10, %p1851_p4 }
  0xe0   : > { %1861 = shalt.err (!%p1858_p1)
}
  0xe1   : > { %p3039_p8 = scmp.ne.s32.totalorder %s3022_s21, 0  ;;  %s3040_s1 = scalar_lea.sflag [#allocation6], %s2412_s26 }
  0xe2   : > { %s2640_s3 = scalar_lea.hbm %s2941_s4, %s2474_s27  ;;  %s492_s22 = scalar_lea.vmem [#allocation10], %s2471_s11 }
  0xe3   : > { %1534 = dma.hbm_to_vmem [thread:$0]  (!%p3039_p8), %s2614_s5, 128, %s461_s15, %s3040_s1  }
  0xe4   : > { %s499_s8 = sshll.u32 %s492_s22, 4  ;;  %s1862_s21 = scalar_lea.hbm %s2640_s3, 512  ;;  %s2643_s8 = int_to_ptr.vmem [resolvable:$true] %s499_s8 }
  0xe5   : > { %p1863_p2 = scmp.ne.s32.totalorder %s2640_s3, %s1862_s21  ;;  %p3041_p10 = scmp.ne.s32.totalorder %s3032_s30, 0 }
  0xe6   : > { %s1867_s15 = scalar_lea.hbm %s2941_s4, 2048  ;;  %p1868_p7 = scmp.lt.u32.totalorder %s2640_s3, %s2941_s4 }
  0xe7   : > { %p1865_p0 = pnand %p1863_p2, %p3041_p10  ;;  %p1869_p6 = scmp.lt.u32.totalorder %s1867_s15, %s1862_s21 }
  0xe8   : > { %p1871_p3 = scmp.lt.u32.totalorder %s1862_s21, %s2640_s3 }
  0xe9   : > { %p1866_p12 = pneg %p1865_p0  ;;  %p1870_p9 = por %p1869_p6, %p1868_p7 }
  0xeb   : > { %p1872_p5 = por %p1871_p3, %p1870_p9 }
  0xed   : > { %p1873_p4 = pnand %p1872_p5, %p1866_p12 }
  0xef   : > { %1876 = shalt.err (!%p1873_p4)
}
  0xf0   : > { %s1877_s11 = scalar_lea.vmem %s2643_s8, 512  ;;  %s2184_s14 = smov [#allocation10]  }
  0xf1   : > { %p1878_p11 = scmp.ne.s32.totalorder %s2643_s8, %s1877_s11  ;;  %s1882_s23 = sshll.u32 %s2184_s14, 4  ;;  %s1883_s23 = int_to_ptr.vmem [resolvable:$false] %s1882_s23 }
  0xf2   : > { %s1884_s20 = scalar_lea.vmem %s1883_s23, 1024  ;;  %p1885_p8 = scmp.lt.s32.totalorder %s2643_s8, %s1883_s23 }
  0xf3   : > { %p1880_p13 = pnand %p1878_p11, %p3041_p10  ;;  %p1886_p2 = scmp.lt.s32.totalorder %s1884_s20, %s1877_s11 }
  0xf5   : > { %p1881_p1 = pneg %p1880_p13  ;;  %p1887_p0 = por %p1886_p2, %p1885_p8 }
  0xf7   : > { %p1888_p7 = pnand %p1887_p0, %p1881_p1 }
  0xf9   : > { %1891 = shalt.err (!%p1888_p7)
}
  0xfa   : > { %p3042_p12 = scmp.ne.s32.totalorder %s3024_s29, 0  ;;  %s3043_s10 = smov 128  }
  0xfb   : > { %s3044_s9 = scalar_lea.sflag [#allocation9], %s2412_s26  ;;  %s2675_s13 = scalar_lea.hbm %s2943_s6, %s2526_s24 }
  0xfc   : > { %1540 = dma.hbm_to_vmem [thread:$0]  (!%p3042_p12), %s2640_s3, 512, %s2643_s8, %s3044_s9, %s3043_s10, %s3043_s10, %s2179_s12  }
  0xfd   : > { %s533_s22 = scalar_lea.vmem [#allocation13], %s2462_s16  ;;  %s1892_s17 = scalar_lea.hbm %s2675_s13, 16 }
  0xfe   : > { %s540_s21 = sshll.u32 %s533_s22, 4  ;;  %p1893_p6 = scmp.ne.s32.totalorder %s2675_s13, %s1892_s17  ;;  %s541_s21 = int_to_ptr.vmem [resolvable:$true] %s540_s21 }
  0xff   : > { %s1897_s12 = scalar_lea.hbm %s2943_s6, 64  ;;  %p1898_p5 = scmp.lt.u32.totalorder %s2675_s13, %s2943_s6 }
 0x100   : > { %p1895_p9 = pnand %p1893_p6, %p3041_p10  ;;  %p1899_p4 = scmp.lt.u32.totalorder %s1897_s12, %s1892_s17 }
 0x101   : > { %p1901_p13 = scmp.lt.u32.totalorder %s1892_s17, %s2675_s13 }
 0x102   : > { %p1896_p3 = pneg %p1895_p9  ;;  %p1900_p11 = por %p1899_p4, %p1898_p5 }
 0x104   : > { %p1902_p1 = por %p1901_p13, %p1900_p11 }
 0x106   : > { %p1903_p8 = pnand %p1902_p1, %p1896_p3 }
 0x108   : > { %1906 = shalt.err (!%p1903_p8)
}
 0x109   : > { %s1907_s18 = scalar_lea.vmem %s541_s21, 16  ;;  %s2185_s27 = smov [#allocation13]  }
 0x10a   : > { %p1908_p2 = scmp.ne.s32.totalorder %s541_s21, %s1907_s18  ;;  %s1912_s11 = sshll.u32 %s2185_s27, 4  ;;  %s1913_s11 = int_to_ptr.vmem [resolvable:$false] %s1912_s11 }
 0x10b   : > { %s1914_s14 = scalar_lea.vmem %s1913_s11, 32  ;;  %p1915_p6 = scmp.lt.s32.totalorder %s541_s21, %s1913_s11 }
 0x10c   : > { %p1910_p0 = pnand %p1908_p2, %p3041_p10  ;;  %p1916_p9 = scmp.lt.s32.totalorder %s1914_s14, %s1907_s18 }
 0x10e   : > { %p1911_p7 = pneg %p1910_p0  ;;  %p1917_p12 = por %p1916_p9, %p1915_p6 }
 0x110   : > { %p1918_p4 = pnand %p1917_p12, %p1911_p7 }
 0x112   : > { %1921 = shalt.err (!%p1918_p4)
}
 0x113   : > { %p3045_p5 = scmp.ne.s32.totalorder %s3024_s29, 0  ;;  %s3046_s23 = scalar_lea.sflag [#allocation12], %s2412_s26 }
 0x114   : > { %s3047_s9 = sld [smem:[#allocation52_spill]]  ;;  %s567_s19 = scalar_lea.vmem [#allocation16], %s2462_s16 }
 0x115   : > { %1546 = dma.hbm_to_vmem [thread:$0]  (!%p3045_p5), %s2675_s13, 16, %s541_s21, %s3046_s23  }
 0x116   : > { %s574_s22 = sshll.u32 %s567_s19, 4  ;;  %s575_s22 = int_to_ptr.vmem [resolvable:$true] %s574_s22 }
 0x11a   : > { %s2701_s1 = scalar_lea.hbm %s3047_s9, %s2526_s24  ;;  %s1927_s13 = scalar_lea.hbm %s3047_s9, 64 }
 0x11b   : > { %s1922_s17 = scalar_lea.hbm %s2701_s1, 16  ;;  %p1928_p13 = scmp.lt.u32.totalorder %s2701_s1, %s3047_s9 }
 0x11c   : > { %p1923_p12 = scmp.ne.s32.totalorder %s2701_s1, %s1922_s17  ;;  %p1929_p1 = scmp.lt.u32.totalorder %s1927_s13, %s1922_s17 }
 0x11d   : > { %p1931_p2 = scmp.lt.u32.totalorder %s1922_s17, %s2701_s1 }
 0x11e   : > { %p1925_p3 = pnand %p1923_p12, %p3041_p10  ;;  %p1930_p8 = por %p1929_p1, %p1928_p13 }
 0x120   : > { %p1926_p11 = pneg %p1925_p3  ;;  %p1932_p0 = por %p1931_p2, %p1930_p8 }
 0x122   : > { %p1933_p7 = pnand %p1932_p0, %p1926_p11 }
 0x124   : > { %1936 = shalt.err (!%p1933_p7)
}
 0x125   : > { %s1937_s24 = scalar_lea.vmem %s575_s22, 16  ;;  %s2186_s16 = smov [#allocation16]  }
 0x126   : > { %p1938_p6 = scmp.ne.s32.totalorder %s575_s22, %s1937_s24  ;;  %s1942_s3 = sshll.u32 %s2186_s16, 4  ;;  %s1943_s3 = int_to_ptr.vmem [resolvable:$false] %s1942_s3 }
 0x127   : > { %s1944_s8 = scalar_lea.vmem %s1943_s3, 32  ;;  %p1945_p12 = scmp.lt.s32.totalorder %s575_s22, %s1943_s3 }
 0x128   : > { %p1940_p9 = pnand %p1938_p6, %p3041_p10  ;;  %p1946_p3 = scmp.lt.s32.totalorder %s1944_s8, %s1937_s24 }
 0x12a   : > { %p1941_p4 = pneg %p1940_p9  ;;  %p1947_p5 = por %p1946_p3, %p1945_p12 }
 0x12c   : > { %p1948_p1 = pnand %p1947_p5, %p1941_p4 }
 0x12e   : > { %1951 = shalt.err (!%p1948_p1)
}
 0x12f   : > { %p3048_p13 = scmp.ne.s32.totalorder %s3024_s29, 0  ;;  %s3049_s18 = scalar_lea.sflag [#allocation15], %s2412_s26 }
 0x130   : > { %s3050_s27 = sld [smem:[#allocation48_spill]] }
 0x131   : > { %1552 = dma.hbm_to_vmem [thread:$0]  (!%p3048_p13), %s2701_s1, 16, %s575_s22, %s3049_s18  }
 0x136   : > { %p3051_p11 = scmp.ne.s32.totalorder %s3050_s27, 0 }
 0x137   : > { %s3052_s30 = sld [smem:[#allocation33_spill]] (!%p3051_p11)  ;;  %s3053_s11 = sld [smem:[#allocation41_spill]] (!%p3051_p11) }
 0x138   : > { %583 = sbr.rel (%p3051_p11) target bundleno = 634 (0x27a), region = 56 }
 0x13d   : > { %s585_s14 = sand.u32 (!%p3051_p11), 1, %s3052_s30   ;;  %p3054_p10 = scmp.ne.s32.totalorder (!%p3051_p11), %s3053_s11, 0 }
 0x13e   : > { %s2726_s23 = sshll.u32 (!%p3051_p11), %s585_s14, 3  ;;  %s586_s20 = scalar_lea.sflag (!%p3051_p11), [#allocation3], %s585_s14 }
 0x13f   : > { %s589_s10 = scalar_lea.vmem [#allocation2], %s2726_s23 }
 0x140   : > { %2093 = dma.done.wait (%p3054_p10), %s586_s20, 128  }
 0x141   : > { %2095 = vsyncadd (%p3054_p10), %s586_s20, 4294967168  ;;  %s3055_s29 = sld [smem:[#allocation38_spill]]  ;;  %s598_s19 = scalar_lea.vmem [#allocation5], %s2726_s23 }
 0x147   : > { %s2734_s26 = sand.u32 1, %s3055_s29  }
 0x148   : > { %s595_s1 = scalar_lea.sflag [#allocation6], %s2734_s26 }
 0x149   : > { %2097 = dma.done.wait (%p3054_p10), %s595_s1, 256  }
 0x14a   : > { %2099 = vsyncadd (%p3054_p10), %s595_s1, 4294967040  ;;  %s3056_s22 = sld [smem:[#allocation31_spill]]  ;;  %s3057_s17 = sld [smem:[#allocation44_spill]] }
 0x14b   : > { %s607_s13 = scalar_lea.vmem [#allocation7], %s2726_s23  ;;  %s613_s21 = scalar_lea.sflag [#allocation9], %s2734_s26 }
 0x150   : > { %s2743_s5 = sand.u32 1, %s3056_s22   ;;  %p3058_p5 = scmp.ne.s32.totalorder %s3057_s17, 0 }
 0x151   : > { %s1409_s15 = sshll.u32 %s2743_s5, 5 }
 0x152   : > { %s616_s12 = scalar_lea.vmem [#allocation8], %s1409_s15 }
 0x153   : > { %2101 = dma.done.wait (%p3058_p5), %s613_s21, 1024  }
 0x154   : > { %2103 = vsyncadd (%p3058_p5), %s613_s21, 4294966272  ;;  %s625_s24 = scalar_lea.vmem [#allocation10], %s1409_s15  ;;  %s631_s16 = scalar_lea.sflag [#allocation12], %s2734_s26 }
 0x155   : > { %s2753_s3 = scalar_lea.vmem [#allocation11], %s1409_s15 }
 0x156   : > { %2105 = dma.done.wait (%p3058_p5), %s631_s16, 528  }
 0x157   : > { %2107 = vsyncadd (%p3058_p5), %s631_s16, 4294966768  ;;  %s642_s8 = scalar_lea.vmem [#allocation13], %s2743_s5  ;;  %s648_s18 = scalar_lea.sflag [#allocation15], %s2734_s26 }
 0x158   : > { %s650_s27 = scalar_lea.vmem [#allocation14], %s2743_s5 }
 0x159   : > { %2109 = dma.done.wait (%p3058_p5), %s648_s18, 32  }
 0x15a   : > { %2111 = vsyncadd (%p3058_p5), %s648_s18, 4294967264  ;;  %v2187_v0 = vmov 0.0|0.0   ;;  %vm2188_vm0 = vmmov 0   ;;  %v2189_v1 = vmov 0.0   ;;  %v745_v2 = vld [vmem:[%s616_s12] sm:$0xff]  ;;  %v746_v3 = vld [vmem:[%s616_s12 + $0x8] sm:$0xff] }
 0x15b   : > { %1483 = vmatprep.subr.bf16.mxu0 %v2187_v0  ;;  %1489 = vmatprep.subr.bf16.mxu1 %v2187_v0  ;;  %v747_v4 = vld [vmem:[%s616_s12 + $0x10] sm:$0xff]  ;;  %v1484_v5 = vpack.c.bf16 %v746_v3, %v745_v2  ;;  %v748_v6 = vld [vmem:[%s616_s12 + $0x18] sm:$0xff]  ;;  %v833_v7 = vld [vmem:[%s625_s24] sm:$0xff]  ;;  %vm756_vm1 = vcmask 261120   ;;  %s3059_s30 = sld [smem:[#allocation29_spill]]  ;;  %s3060_s11 = sld [smem:[#allocation35_spill]] }
 0x15c   : > { %1458 = vmatprep.mubr.msk.f32.mxu0 %vm2188_vm0, %v2189_v1  ;;  %1469 = vmatprep.mubr.msk.f32.mxu1 %vm2188_vm0, %v2189_v1  ;;  %v834_v8 = vld [vmem:[%s625_s24 + $0x8] sm:$0xff]  ;;  %v1487_v10 = vpack.c.bf16 %v748_v6, %v747_v4  ;;  %v835_v11 = vld [vmem:[%s625_s24 + $0x10] sm:$0xff]  ;;  %v836_v12 = vld [vmem:[%s625_s24 + $0x18] sm:$0xff]  ;;  %s3061_s14 = sld [smem:[#allocation34_spill]]  ;;  %vm830_vm2 = vcmask 64512   ;;  %s3063_s24 = sld [smem:[#allocation53_spill]] }
 0x15d   : > { %v1490_v9 = vpack.c.bf16 %v834_v8, %v833_v7  ;;  %1485 = vmatpush3.bf16.msra.mxu0 %v1484_v5  ;;  %v919_v13 = vld [vmem:[%s2753_s3] sm:$0xff]  ;;  %v920_v14 = vld [vmem:[%s2753_s3 + $0x8] sm:$0xff]  ;;  %v1493_v15 = vpack.c.bf16 %v836_v12, %v835_v11  ;;  %v744_v16 = vld [vmem:[%s589_s10] sm:$0xff] }
 0x15e   : > { %1486 = vmatprep.subr.bf16.mxu0 %v2187_v0  ;;  %v1496_v17 = vpack.c.bf16 %v920_v14, %v919_v13  ;;  %v921_v18 = vld [vmem:[%s2753_s3 + $0x10] sm:$0xff]  ;;  %v922_v19 = vld [vmem:[%s2753_s3 + $0x18] sm:$0xff]  ;;  %v832_v20 = vld [vmem:[%s598_s19] sm:$0xff] }
 0x15f   : > { %1491 = vmatpush3.bf16.msra.mxu1 %v1490_v9  ;;  %v1499_v21 = vpack.c.bf16 %v922_v19, %v921_v18  ;;  %v918_v22 = vld [vmem:[%s607_s13] sm:$0xff]  ;;  %s3062_s13 = sld [smem:[#allocation46_spill]] }
 0x160   : > { %1492 = vmatprep.subr.bf16.mxu1 %v2187_v0  ;;  %v1415_v23 = vld [vmem:[%s642_s8] ss:$0 sm:$0xff] }
 0x161   : > { %1488 = vmatpush3.bf16.msra.mxu0 %v1487_v10  ;;  %s727_s20 = sand.u32 1, %s3059_s30   ;;  %s1424_s10 = sshll.u32 %s3060_s11, 2  ;;  %v1417_v24 = vld [vmem:[%s650_s27] ss:$0 sm:$0xff] }
 0x162   : > { %1495 = vmatprep.subr.bf16.mxu0 %v2187_v0  ;;  %s2781_s29 = sshll.u32 %s727_s20, 3  ;;  %s1027_s1 = sadd.s32 %s3061_s14, %s1424_s10 }
 0x163   : > { %1494 = vmatpush3.bf16.msra.mxu1 %v1493_v15  ;;  %s2786_s19 = sshll.u32 %s1027_s1, 7  ;;  %s729_s22 = scalar_lea.vmem [#allocation17], %s2781_s29 }
 0x164   : > { %1459 = vmatmul.mubr.msk.f32.vlgmr.msra.gmra.mrb[0].mxu0 %vm756_vm1, %v744_v16  ;;  %s1031_s17 = sshll.u32 %s729_s22, 4  ;;  %s736_s23 = scalar_lea.vmem [#allocation18], %s2781_s29  ;;  %s2798_s17 = int_to_ptr.vmem [resolvable:$true] %s1031_s17 }
 0x165   : > { %1497 = vmatpush3.bf16.msra.mxu0 %v1496_v17  ;;  %1480 = vmatprep.mubr.msk.f32.mxu0 %vm2188_vm0, %v2189_v1  ;;  %s1047_s15 = sshll.u32 %s736_s23, 4  ;;  %s3064_s16 = smov %s3063_s24  ;;  %s2806_s15 = int_to_ptr.vmem [resolvable:$true] %s1047_s15 }
 0x166   : > { %1470 = vmatmul.mubr.msk.f32.vlgmr.msra.gmra.mrb[0].mxu1 %vm756_vm1, %v832_v20  ;;  %1498 = vmatprep.subr.bf16.mxu0 %v2187_v0  ;;  %s2796_s3 = scalar_lea.hbm %s3063_s24, %s2786_s19  ;;  %s3065_s27 = sld [smem:[#allocation54_spill]] }
 0x167   : > { %s1005_s14 = scalar_lea.sflag [#allocation4], %s727_s20  ;;  %s1952_s10 = scalar_lea.vmem %s2798_s17, 128 }
 0x168   : > { %p1953_p8 = scmp.ne.s32.totalorder %s2798_s17, %s1952_s10  ;;  %p3067_p2 = scmp.ne.s32.totalorder %s3062_s13, 0 }
 0x169   : > { %1500 = vmatpush3.bf16.msra.mxu0 %v1499_v21  ;;  %s2190_s1 = smov [#allocation17]  }
 0x16a   : > { %p1954_p0 = pnand %p1953_p8, %p3067_p2  ;;  %s1956_s21 = sshll.u32 %s2190_s1, 4  ;;  %s1957_s21 = int_to_ptr.vmem [resolvable:$false] %s1956_s21 }
 0x16b   : > { %s1958_s12 = scalar_lea.vmem %s1957_s21, 256  ;;  %p1959_p6 = scmp.lt.s32.totalorder %s2798_s17, %s1957_s21 }
 0x16c   : > { %1481 = vmatmul.mubr.msk.f32.vlgmr.msra.gmra.mrb[2].mxu0 %vm756_vm1, %v918_v22  ;;  %s3066_s11 = smov %s3065_s27  ;;  %s2804_s30 = scalar_lea.hbm %s3065_s27, %s2786_s19 }
 0x16d   : > { %p1955_p7 = pneg %p1954_p0  ;;  %p1960_p9 = scmp.lt.s32.totalorder %s1958_s12, %s1952_s10 }
 0x16f   : > { %p1961_p4 = por %p1960_p9, %p1959_p6 }
 0x171   : > { %p1962_p12 = pnand %p1961_p4, %p1955_p7 }
 0x237   : > { %v826_v25 = vpop.f32.mrb[0].mxu0 }
 0x238   : > { %v827_v26 = vadd.f32 %v1415_v23, %v826_v25  ;;  %v1460_v27 = vpop.f32.mrb[1].mxu0 }
 0x239   : > { %v913_v28 = vpop.f32.mrb[0].mxu1 }
 0x23a   : > { %v914_v29 = vadd.f32 %v1417_v24, %v913_v28  ;;  %v1471_v30 = vpop.f32.mrb[1].mxu1  ;;  %831 = vst.msk [vmem:[%s729_s22] sm:$0xff] %vm830_vm2, %v827_v26 }
 0x23c   : > { %917 = vst.msk [vmem:[%s736_s23] sm:$0xff] %vm830_vm2, %v914_v29 }
 0x23d   : > { %1965 = shalt.err (!%p1962_p12)
}
 0x23e   : > { %s1966_s20 = scalar_lea.hbm %s2796_s3, 128  ;;  %s1970_s24 = scalar_lea.hbm %s3064_s16, 1024 }
 0x23f   : > { %p1967_p3 = scmp.ne.s32.totalorder %s2796_s3, %s1966_s20  ;;  %p1971_p11 = scmp.lt.u32.totalorder %s2796_s3, %s3064_s16 }
 0x240   : > { %p1972_p10 = scmp.lt.u32.totalorder %s1970_s24, %s1966_s20  ;;  %p1974_p8 = scmp.lt.u32.totalorder %s1966_s20, %s2796_s3 }
 0x241   : > { %p1968_p1 = pnand %p1967_p3, %p3067_p2 }
 0x242   : > { %p1973_p5 = por %p1972_p10, %p1971_p11 }
 0x243   : > { %p1969_p13 = pneg %p1968_p1 }
 0x244   : > { %p1975_p0 = por %p1974_p8, %p1973_p5 }
 0x246   : > { %p1976_p7 = pnand %p1975_p0, %p1969_p13 }
 0x248   : > { %1979 = shalt.err (!%p1976_p7)
}
 0x249   : > { %1519 = dma.vmem_to_hbm [thread:$0]  (%p3067_p2), %s2798_s17, 128, %s2796_s3, %s1005_s14  }
 0x24a   : > { %s1010_s27 = scalar_lea.sflag [#allocation19], %s2734_s26  ;;  %s1980_s10 = scalar_lea.vmem %s2806_s15, 128 }
 0x24b   : > { %p1981_p6 = scmp.ne.s32.totalorder %s2806_s15, %s1980_s10  ;;  %s2191_s1 = smov [#allocation18]  }
 0x24c   : > { %s1984_s21 = sshll.u32 %s2191_s1, 4  ;;  %s1985_s21 = int_to_ptr.vmem [resolvable:$false] %s1984_s21 }
 0x24d   : > { %p1982_p9 = pnand %p1981_p6, %p3067_p2  ;;  %s1986_s12 = scalar_lea.vmem %s1985_s21, 256 }
 0x24e   : > { %p1987_p12 = scmp.lt.s32.totalorder %s2806_s15, %s1985_s21  ;;  %p1988_p3 = scmp.lt.s32.totalorder %s1986_s12, %s1980_s10 }
 0x24f   : > { %p1983_p4 = pneg %p1982_p9 }
 0x250   : > { %p1989_p1 = por %p1988_p3, %p1987_p12 }
 0x252   : > { %p1990_p13 = pnand %p1989_p1, %p1983_p4 }
 0x254   : > { %1993 = shalt.err (!%p1990_p13)
}
 0x255   : > { %s1994_s17 = scalar_lea.hbm %s2804_s30, 128  ;;  %s1998_s20 = scalar_lea.hbm %s3066_s11, 1024 }
 0x256   : > { %p1995_p11 = scmp.ne.s32.totalorder %s2804_s30, %s1994_s17  ;;  %p1999_p8 = scmp.lt.u32.totalorder %s2804_s30, %s3066_s11 }
 0x257   : > { %p2000_p0 = scmp.lt.u32.totalorder %s1998_s20, %s1994_s17  ;;  %p2002_p6 = scmp.lt.u32.totalorder %s1994_s17, %s2804_s30 }
 0x258   : > { %p1996_p10 = pnand %p1995_p11, %p3067_p2 }
 0x259   : > { %p2001_p7 = por %p2000_p0, %p1999_p8 }
 0x25a   : > { %p1997_p5 = pneg %p1996_p10 }
 0x25b   : > { %p2003_p9 = por %p2002_p6, %p2001_p7 }
 0x25d   : > { %p2004_p4 = pnand %p2003_p9, %p1997_p5 }
 0x25f   : > { %2007 = shalt.err (!%p2004_p4)
}
 0x260   : > { %1520 = dma.vmem_to_hbm [thread:$0]  (%p3067_p2), %s2806_s15, 128, %s2804_s30, %s1010_s27   ;;  %v999_v32 = vpop.f32.mrb[2].mxu0 }
 0x261   : > { %s658_s24 = scalar_lea.vmem [#allocation16], %s2743_s5  ;;  %s743_s8 = scalar_lea.vmem [#allocation20], %s2781_s29  ;;  %v1482_v34 = vpop.f32.mrb[3].mxu0 }
 0x262   : > { %v1419_v31 = vld [vmem:[%s658_s24] ss:$0 sm:$0xff]  ;;  %s1063_s18 = sshll.u32 %s743_s8, 4  ;;  %s3068_s21 = sld [smem:[#allocation55_spill]]  ;;  %s1064_s18 = int_to_ptr.vmem [resolvable:$true] %s1063_s18 }
 0x263   : > { %v1000_v33 = vadd.f32 %v1419_v31, %v999_v32  ;;  %s2008_s3 = scalar_lea.vmem %s1064_s18, 128  ;;  %s2192_s5 = smov [#allocation20]  }
 0x264   : > { %p2009_p12 = scmp.ne.s32.totalorder %s1064_s18, %s2008_s3  ;;  %s2012_s15 = sshll.u32 %s2192_s5, 4  ;;  %s2013_s15 = int_to_ptr.vmem [resolvable:$false] %s2012_s15 }
 0x265   : > { %1003 = vst.msk [vmem:[%s743_s8] sm:$0xff] %vm830_vm2, %v1000_v33  ;;  %s2014_s29 = scalar_lea.vmem %s2013_s15, 256  ;;  %p2015_p13 = scmp.lt.s32.totalorder %s1064_s18, %s2013_s15 }
 0x266   : > { %p2010_p3 = pnand %p2009_p12, %p3067_p2  ;;  %p2016_p11 = scmp.lt.s32.totalorder %s2014_s29, %s2008_s3 }
 0x268   : > { %s3069_s12 = smov %s3068_s21  ;;  %s2861_s17 = scalar_lea.hbm %s3068_s21, %s2786_s19 }
 0x269   : > { %p2011_p1 = pneg %p2010_p3  ;;  %p2017_p10 = por %p2016_p11, %p2015_p13 }
 0x26b   : > { %p2018_p5 = pnand %p2017_p10, %p2011_p1 }
 0x26d   : > { %2021 = shalt.err (!%p2018_p5)
}
 0x26e   : > { %s2022_s19 = scalar_lea.hbm %s2861_s17, 128  ;;  %s2026_s20 = scalar_lea.hbm %s3069_s12, 1024 }
 0x26f   : > { %p2023_p8 = scmp.ne.s32.totalorder %s2861_s17, %s2022_s19  ;;  %p2027_p6 = scmp.lt.u32.totalorder %s2861_s17, %s3069_s12 }
 0x270   : > { %p2028_p9 = scmp.lt.u32.totalorder %s2026_s20, %s2022_s19  ;;  %p2030_p12 = scmp.lt.u32.totalorder %s2022_s19, %s2861_s17 }
 0x271   : > { %p2024_p0 = pnand %p2023_p8, %p3067_p2 }
 0x272   : > { %p2029_p4 = por %p2028_p9, %p2027_p6 }
 0x273   : > { %p2025_p7 = pneg %p2024_p0 }
 0x274   : > { %p2031_p3 = por %p2030_p12, %p2029_p4 }
 0x276   : > { %p2032_p1 = pnand %p2031_p3, %p2025_p7 }
 0x278   : > { %2035 = shalt.err (!%p2032_p1)
}
 0x279   : > { %1521 = dma.vmem_to_hbm [thread:$0]  (%p3067_p2), %s1064_s18, 128, %s2861_s17, %s1010_s27  }
 0x27a PF: > { %s3070_s24 = sld [smem:[#allocation37_spill]]  ;;  %s3071_s8 = sld [smem:[#allocation28_spill]] }
 0x27b   : > { %s3072_s10 = sld [smem:[#allocation47_spill]] }
 0x280   : > { %p1564_p13 = scmp.ge.s32.totalorder %s3070_s24, 2  ;;  %s1075_s1 = sand.u32 1, %s3071_s8  }
 0x281   : > { %p3073_p11 = scmp.ne.s32.totalorder %s3072_s10, 0  ;;  %s1076_s21 = scalar_lea.sflag [#allocation4], %s1075_s1 }
 0x283   : > { %p1554_p10 = pnand %p1564_p13, %p3073_p11 }
 0x285   : > { %2113 = dma.done.wait (!%p1554_p10), %s1076_s21, 128  }
 0x286   : > { %2115 = vsyncadd (!%p1554_p10), %s1076_s21, 4294967168  ;;  %s3074_s3 = sadd.s32 4294967294, %s3070_s24  }
 0x287   : > { %s1084_s5 = sand.u32 1, %s3074_s3  }
 0x288   : > { %s1085_s15 = scalar_lea.sflag [#allocation19], %s1084_s5 }
 0x289   : > { %2117 = dma.done.wait (!%p1554_p10), %s1085_s15, 256  }
 0x28a   : > { %2119 = vsyncadd (!%p1554_p10), %s1085_s15, 4294967040  ;;  %s43_s30 = sadd.s32 1, %s3070_s24   ;;  %s3076_s17 = sld [smem:[#allocation29_spill]] }
 0x28b   : > { %p2890_p2 = scmp.ge.s32.totalorder %s43_s30, 10   ;;  %s3077_s18 = sld [smem:[#allocation30_spill]] }
 0x28c   : > { %s3078_s19 = sld [smem:[#allocation45_spill]]  ;;  %s3080_s21 = sld [smem:[#allocation32_spill]] }
 0x28d   : > { %s3079_s20 = sld [smem:[#allocation31_spill]]  ;;  %s3081_s22 = sld [smem:[#allocation42_spill]] }
 0x28e   : > { %s3082_s23 = sld [smem:[#allocation33_spill]]  ;;  %s3083_s13 = sld [smem:[#allocation43_spill]] }
 0x28f   : > { %s3084_s27 = sld [smem:[#allocation36_spill]]  ;;  %s3085_s29 = sld [smem:[#allocation39_spill]] }
 0x290   : > { %s3086_s14 = sld [smem:[#allocation40_spill]]  ;;  %s3088_s24 = smov %s2154_s25 }
 0x291   : > { %s3090_s26 = smov %s2166_s28  ;;  %42 = sbr.rel (!%p2890_p2) target bundleno = 28 (0x1c), region = 229 }
 0x294   : > { %s3089_s25 = smov %s3083_s13 }
 0x295   : > { %s3091_s28 = smov %s3085_s29 }
 0x296   : > { %s3092_s29 = smov %s3086_s14 }
 0x298   :  { %1099 = vsyncpa [#allocation3], 1 }
 0x299   :  { %1101 = vsyncpa [#allocation3 + $0x1], 1 }
 0x29a   :  { %1102 = vsyncpa [#allocation6], 1 }
 0x29b   :  { %1104 = vsyncpa [#allocation6 + $0x1], 1 }
 0x29c   :  { %1105 = vsyncpa [#allocation9], 1 }
 0x29d   :  { %1107 = vsyncpa [#allocation9 + $0x1], 1 }
 0x29e   :  { %1108 = vsyncpa [#allocation12], 1 }
 0x29f   :  { %1110 = vsyncpa [#allocation12 + $0x1], 1 }
 0x2a0   :  { %1111 = vsyncpa [#allocation15], 1 }
 0x2a1   :  { %1113 = vsyncpa [#allocation15 + $0x1], 1 }
 0x2a2   :  { %1114 = vsyncpa [#allocation4], 1 }
 0x2a3   :  { %1116 = vsyncpa [#allocation4 + $0x1], 1 }
 0x2a4   :  { %1117 = vsyncpa [#allocation19], 1 }
 0x2a5   :  { %1119 = vsyncpa [#allocation19 + $0x1], 1 }

</bundles_post_ra>
